<compile_context>
chip_gen: v6e
topology: v6e:2x2x1
jax: 0.10.0
libtpu: 0.0.40
codegen_flags: <defaults>
</compile_context>

<pallas_src>
import functools

import jax
import jax.numpy as jnp
from jax.experimental import pallas as pl
from jax.experimental.pallas import tpu as pltpu


def _attention_kernel(x_ref, k_ref, v_ref, wq_ref, bq_ref, wp_ref, bp_ref,
                      o_ref, *, heads):
    """One (batch b, query-tile qi) grid step.

    x_ref  : (tq, C)    bf16  query tile of the input sequence
    k_ref  : (H, N, hd) bf16  pre-projected keys   (head-major, computed outside)
    v_ref  : (H, N, hd) bf16  pre-projected values (head-major, computed outside)
    wq_ref : (C, C)     bf16  query weight, softmax scale folded in
    bq_ref : (1, C)     f32   query bias,  softmax scale folded in
    wp_ref : (C, C)     bf16  output-projection weight
    bp_ref : (1, C)     f32   output-projection bias
    o_ref  : (tq, C)          output tile
    """
    f32 = jnp.float32
    bf16 = jnp.bfloat16

    xq = x_ref[...]                               # (tq, C) bf16
    tq, C = xq.shape
    hd = C // heads

    kh = k_ref[...]                               # (H, N, hd) bf16 — no relayout needed
    vh = v_ref[...]                               # (H, N, hd) bf16

    # Q projection — softmax scale is pre-folded into wq AND bq on the host.
    q = jnp.dot(xq, wq_ref[...], preferred_element_type=f32) + bq_ref[...]
    qh = q.reshape(tq, heads, hd).transpose(1, 0, 2).astype(bf16)   # (H, tq, hd)

    # Scores / softmax / attn @ V, batched over heads (single dot_general each).
    # TODO(synk): for very large N on v7x, switch to a flash-style online softmax
    # over K/V tiles to avoid materializing the (H, tq, N) f32 scores.
    s = jnp.einsum('hqd,hkd->hqk', qh, kh, preferred_element_type=f32)
    s = s - jnp.max(s, axis=-1, keepdims=True)
    # TODO(synk): do this exp in bf16 on v6e/v7x (bf16 EUP); keep f32 on v5e.
    p = jnp.exp(s)
    p = p * pl.reciprocal(jnp.sum(p, axis=-1, keepdims=True), approx=True)
    # attn_drop: identity in eval mode.

    o = jnp.einsum('hqk,hkd->hqd', p.astype(bf16), vh,
                   preferred_element_type=f32)                      # (H, tq, hd)

    # Merge heads, then output projection (proj_drop: identity in eval mode).
    # TODO(synk): fuse the head-merge into the projection with a ((0,2),(0,1))
    # contracting dot_general once Mosaic lowers multi-contracting dot_general.
    o = o.transpose(1, 0, 2).reshape(tq, C)
    out = jnp.dot(o.astype(bf16), wp_ref[...], preferred_element_type=f32) + bp_ref[...]
    o_ref[...] = out.astype(o_ref.dtype)


def _vmem_bytes(N, C, heads, tq):
    """Conservative estimate of resident VMEM bytes for one grid step."""
    BF, F = 2, 4
    hd = C // heads
    weights = 2 * C * C * BF + 2 * C * F * 2            # wq + wp (single-buffered) + biases
    x_io = 2 * tq * C * BF + 2 * tq * C * F             # x tile + out tile, double-buffered
    kv = 2 * 2 * heads * N * hd * BF                    # K and V, double-buffered
    inter = (tq * C * (F + BF)                          # q f32 + qh bf16
             + heads * tq * N * (2 * F + BF)            # scores, exp, p
             + tq * C * (F + BF)                        # o f32 + o bf16
             + tq * C * F)                              # projected output f32
    return weights + x_io + kv + inter


def _pick_tq(N, C, heads, vmem_budget):
    """Largest query tile (multiple of 8, divides N, <= 256) fitting the VMEM budget."""
    if N % 8 != 0:
        return N                                        # tiny / ragged sequence: one tile
    cands = sorted({t for t in range(8, min(N, 256) + 1, 8) if N % t == 0},
                   reverse=True)
    for t in cands:
        if _vmem_bytes(N, C, heads, t) <= vmem_budget:
            return t
    return cands[-1]


def attention_forward(x, params, heads):
    """x: (B, N, C) float32.  params: dict of (C_in, C_out) weights and (1, C) biases."""
    B, N, C = x.shape
    assert C % heads == 0
    hd = C // heads
    scale = hd ** (-0.5)
    bf16, f32 = jnp.bfloat16, jnp.float32

    # ---- host / XLA-side prep -------------------------------------------------
    # bf16 input halves HBM DMA bytes (the kernel uses bf16 matmul operands anyway).
    x_bf = x.astype(bf16)

    # K/V projections are computed ONCE here as plain XLA GEMMs and handed to the
    # kernel already head-major, so the kernel never recomputes or relayouts K/V.
    def head_major_proj(w, b):
        y = jnp.dot(x_bf, w.astype(bf16), preferred_element_type=f32) + b.astype(f32)
        return y.reshape(B, N, heads, hd).transpose(0, 2, 1, 3).astype(bf16)

    k = head_major_proj(params["wk"], params["bk"])     # (B, H, N, hd) bf16
    v = head_major_proj(params["wv"], params["bv"])     # (B, H, N, hd) bf16

    # Softmax scale folded into BOTH wq and bq: (x @ wq + bq) * scale.
    wq = (params["wq"] * scale).astype(bf16)
    bq = (params["bq"] * scale).astype(f32)
    wp = params["wp"].astype(bf16)
    bp = params["bp"].astype(f32)

    # ---- generation-aware tiling / explicit VMEM budget -----------------------
    try:
        vmem_cap = int(pltpu.get_tpu_info().vmem_capacity_bytes)
    except Exception:
        vmem_cap = 64 * 1024 * 1024                     # conservative (v7x-sized) fallback
    tq = _pick_tq(N, C, heads, int(vmem_cap * 0.7))
    vmem_limit = int(min(vmem_cap,
                         max(int(_vmem_bytes(N, C, heads, tq) * 1.25) + (4 << 20),
                             32 << 20)))

    kernel = functools.partial(_attention_kernel, heads=heads)
    const = pl.Buffered(1)   # constant-index blocks: single-buffer (halves weight VMEM)

    return pl.pallas_call(
        kernel,
        out_shape=jax.ShapeDtypeStruct((B, N, C), x.dtype),
        grid_spec=pltpu.PrefetchScalarGridSpec(
            num_scalar_prefetch=0,
            grid=(B, pl.cdiv(N, tq)),
            in_specs=[
                pl.BlockSpec((None, tq, C), lambda b, qi: (b, qi, 0)),           # x tile
                pl.BlockSpec((None, heads, N, hd), lambda b, qi: (b, 0, 0, 0)),  # K (per b)
                pl.BlockSpec((None, heads, N, hd), lambda b, qi: (b, 0, 0, 0)),  # V (per b)
                pl.BlockSpec((C, C), lambda b, qi: (0, 0), pipeline_mode=const),  # wq
                pl.BlockSpec((1, C), lambda b, qi: (0, 0), pipeline_mode=const),  # bq
                pl.BlockSpec((C, C), lambda b, qi: (0, 0), pipeline_mode=const),  # wp
                pl.BlockSpec((1, C), lambda b, qi: (0, 0), pipeline_mode=const),  # bp
            ],
            out_specs=pl.BlockSpec((None, tq, C), lambda b, qi: (b, qi, 0)),
        ),
        compiler_params=pltpu.CompilerParams(
            dimension_semantics=("parallel", "parallel"),
            vmem_limit_bytes=vmem_limit),
    )(x_bf, k, v, wq, bq, wp, bp)


def _reference(x, params, heads):
    """Pure-JAX fp32 reference matching the PyTorch forward exactly."""
    B, N, C = x.shape
    hd = C // heads
    scale = hd ** (-0.5)

    def linear(x, w, b):
        return x @ w + b

    q = linear(x, params["wq"], params["bq"]).reshape(B, N, heads, hd).transpose(0, 2, 1, 3)
    k = linear(x, params["wk"], params["bk"]).reshape(B, N, heads, hd).transpose(0, 2, 1, 3)
    v = linear(x, params["wv"], params["bv"]).reshape(B, N, heads, hd).transpose(0, 2, 1, 3)
    attn = jnp.einsum("bhqd,bhkd->bhqk", q, k) * scale
    attn = jax.nn.softmax(attn, axis=-1)
    o = jnp.einsum("bhqk,bhkd->bhqd", attn, v).transpose(0, 2, 1, 3).reshape(B, N, C)
    return linear(o, params["wp"], params["bp"])


def init_params(key, dim):
    """Deterministic trunc_normal-style init; weights stored as (C_in, C_out)."""
    keys = jax.random.split(key, 8)

    def w(k):
        return jax.random.truncated_normal(k, -2.0, 2.0, (dim, dim), jnp.float32) * 0.02

    def b(k):
        return jax.random.normal(k, (1, dim), jnp.float32) * 0.02

    return {
        "wq": w(keys[0]), "bq": b(keys[1]),
        "wk": w(keys[2]), "bk": b(keys[3]),
        "wv": w(keys[4]), "bv": b(keys[5]),
        "wp": w(keys[6]), "bp": b(keys[7]),
    }


if __name__ == "__main__":
    key = jax.random.PRNGKey(0)
    kx, kp, kx2, kp2 = jax.random.split(key, 4)

    # Small shapes consistent with the module: batch=2, seq=8, dim=32, heads=4.
    B, N, C, HEADS = 2, 8, 32, 4
    x = jax.random.normal(kx, (B, N, C), jnp.float32)
    params = init_params(kp, C)

    out = attention_forward(x, params, HEADS)
    out = jax.block_until_ready(out)
    ref = _reference(x, params, HEADS)
    assert out.shape == (B, N, C)
    # bf16 matmul operands (fp32 accumulation) + approx reciprocal -> loose tolerance.
    assert jnp.allclose(out, ref, atol=2e-2, rtol=2e-2), "mismatch vs reference (small)"

    # Second check exercising (8,128)-aligned tiles and a multi-tile query grid
    # (addresses the 'only tiny shapes tested' review concern). Still small/fast.
    B2, N2, C2, H2 = 2, 512, 256, 4
    x2 = jax.random.normal(kx2, (B2, N2, C2), jnp.float32)
    params2 = init_params(kp2, C2)
    out2 = jax.block_until_ready(attention_forward(x2, params2, H2))
    ref2 = _reference(x2, params2, H2)
    assert jnp.allclose(out2, ref2, atol=2e-2, rtol=2e-2), "mismatch vs reference (tiled)"

    print("KERNEL_OK")
</pallas_src>

<mosaic_0001>
module attributes {stable_mosaic.version = 11 : i64} {
  func.func @_attention_kernel(%arg0: i32, %arg1: i32, %arg2: memref<1x8x32xbf16, #tpu.memory_space<vmem>>, %arg3: memref<1x4x8x8xbf16, #tpu.memory_space<vmem>>, %arg4: memref<1x4x8x8xbf16, #tpu.memory_space<vmem>>, %arg5: memref<32x32xbf16, #tpu.memory_space<vmem>>, %arg6: memref<1x32xf32, #tpu.memory_space<vmem>>, %arg7: memref<32x32xbf16, #tpu.memory_space<vmem>>, %arg8: memref<1x32xf32, #tpu.memory_space<vmem>>, %arg9: memref<1x8x32xf32, #tpu.memory_space<vmem>>) attributes {dimension_semantics = [#tpu.dimension_semantics<parallel>, #tpu.dimension_semantics<parallel>], iteration_bounds = array<i64: 2, 1>, scalar_prefetch = 0 : i64, scratch_operands = 0 : i64, tpu.core_type = #tpu.core_type<tc>, window_params = [{transform_indices = @transform_0, window_bounds = array<i64: 1, 8, 32>}, {transform_indices = @transform_1, window_bounds = array<i64: 1, 4, 8, 8>}, {transform_indices = @transform_2, window_bounds = array<i64: 1, 4, 8, 8>}, {pipeline_mode = #tpu.pipeline_mode<synchronous>, transform_indices = @transform_3, window_bounds = array<i64: 32, 32>}, {pipeline_mode = #tpu.pipeline_mode<synchronous>, transform_indices = @transform_4, window_bounds = array<i64: 1, 32>}, {pipeline_mode = #tpu.pipeline_mode<synchronous>, transform_indices = @transform_5, window_bounds = array<i64: 32, 32>}, {pipeline_mode = #tpu.pipeline_mode<synchronous>, transform_indices = @transform_6, window_bounds = array<i64: 1, 32>}, {transform_indices = @transform_7, window_bounds = array<i64: 1, 8, 32>}]} {
    %c0 = arith.constant 0 : index
    %c0_0 = arith.constant 0 : index
    %c0_1 = arith.constant 0 : index
    %0 = vector.load %arg2[%c0, %c0_0, %c0_1] : memref<1x8x32xbf16, #tpu.memory_space<vmem>>, vector<1x8x32xbf16>
    %1 = vector.shape_cast %0 : vector<1x8x32xbf16> to vector<8x32xbf16>
    %c0_2 = arith.constant 0 : index
    %c0_3 = arith.constant 0 : index
    %c0_4 = arith.constant 0 : index
    %c0_5 = arith.constant 0 : index
    %2 = vector.load %arg3[%c0_2, %c0_3, %c0_4, %c0_5] : memref<1x4x8x8xbf16, #tpu.memory_space<vmem>>, vector<1x4x8x8xbf16>
    %3 = vector.shape_cast %2 : vector<1x4x8x8xbf16> to vector<4x8x8xbf16>
    %c0_6 = arith.constant 0 : index
    %c0_7 = arith.constant 0 : index
    %c0_8 = arith.constant 0 : index
    %c0_9 = arith.constant 0 : index
    %4 = vector.load %arg4[%c0_6, %c0_7, %c0_8, %c0_9] : memref<1x4x8x8xbf16, #tpu.memory_space<vmem>>, vector<1x4x8x8xbf16>
    %5 = vector.shape_cast %4 : vector<1x4x8x8xbf16> to vector<4x8x8xbf16>
    %c0_10 = arith.constant 0 : index
    %c0_11 = arith.constant 0 : index
    %6 = vector.load %arg5[%c0_10, %c0_11] : memref<32x32xbf16, #tpu.memory_space<vmem>>, vector<32x32xbf16>
    %cst = arith.constant dense<0.000000e+00> : vector<8x32xf32>
    %7 = tpu.matmul %1, %6, %cst {dimension_numbers = #tpu.dot_dimension_numbers<[1], [0], [0], [1], [0, 0, 1, 1], [], []>} : vector<8x32xbf16>, vector<32x32xbf16>, vector<8x32xf32> -> vector<8x32xf32>
    %c0_12 = arith.constant 0 : index
    %c0_13 = arith.constant 0 : index
    %8 = vector.load %arg6[%c0_12, %c0_13] : memref<1x32xf32, #tpu.memory_space<vmem>>, vector<1x32xf32>
    %9 = vector.broadcast %8 : vector<1x32xf32> to vector<8x32xf32>
    %10 = arith.addf %7, %9 : vector<8x32xf32>
    %11 = vector.shape_cast %10 : vector<8x32xf32> to vector<8x4x8xf32>
    %12 = tpu.transpose %11, [1, 0, 2] : vector<8x4x8xf32> -> vector<4x8x8xf32>
    %13 = arith.truncf %12 : vector<4x8x8xf32> to vector<4x8x8xbf16>
    "tpu.trace_start"() <{level = 10 : i32, message = "hqd,hkd->hqk"}> : () -> ()
    %cst_14 = arith.constant dense<0.000000e+00> : vector<4x8x8xf32>
    %14 = tpu.matmul %13, %3, %cst_14 {dimension_numbers = #tpu.dot_dimension_numbers<[2], [2], [1], [1], [0, 0, 0, 1, 1, 1], [0], [0]>} : vector<4x8x8xbf16>, vector<4x8x8xbf16>, vector<4x8x8xf32> -> vector<4x8x8xf32>
    "tpu.trace_stop"() : () -> ()
    %cst_15 = arith.constant dense<0xFF800000> : vector<4x8xf32>
    %15 = vector.multi_reduction <maximumf>, %14, %cst_15 [2] : vector<4x8x8xf32> to vector<4x8xf32>
    %16 = vector.shape_cast %15 : vector<4x8xf32> to vector<4x8x1xf32>
    %17 = vector.broadcast %16 : vector<4x8x1xf32> to vector<4x8x8xf32>
    %18 = arith.subf %14, %17 : vector<4x8x8xf32>
    %19 = math.exp %18 : vector<4x8x8xf32>
    %cst_16 = arith.constant dense<0.000000e+00> : vector<4x8xf32>
    %20 = vector.multi_reduction <add>, %19, %cst_16 [2] : vector<4x8x8xf32> to vector<4x8xf32>
    %21 = vector.shape_cast %20 : vector<4x8xf32> to vector<4x8x1xf32>
    %22 = tpu.reciprocal %21 {approx = true} : vector<4x8x1xf32> -> vector<4x8x1xf32>
    %23 = vector.broadcast %22 : vector<4x8x1xf32> to vector<4x8x8xf32>
    %24 = arith.mulf %19, %23 : vector<4x8x8xf32>
    %25 = arith.truncf %24 : vector<4x8x8xf32> to vector<4x8x8xbf16>
    "tpu.trace_start"() <{level = 10 : i32, message = "hqk,hkd->hqd"}> : () -> ()
    %cst_17 = arith.constant dense<0.000000e+00> : vector<4x8x8xf32>
    %26 = tpu.matmul %25, %5, %cst_17 {dimension_numbers = #tpu.dot_dimension_numbers<[2], [1], [1], [2], [0, 0, 0, 1, 1, 2], [0], [0]>} : vector<4x8x8xbf16>, vector<4x8x8xbf16>, vector<4x8x8xf32> -> vector<4x8x8xf32>
    "tpu.trace_stop"() : () -> ()
    %27 = tpu.transpose %26, [1, 0, 2] : vector<4x8x8xf32> -> vector<8x4x8xf32>
    %28 = vector.shape_cast %27 : vector<8x4x8xf32> to vector<8x32xf32>
    %29 = arith.truncf %28 : vector<8x32xf32> to vector<8x32xbf16>
    %c0_18 = arith.constant 0 : index
    %c0_19 = arith.constant 0 : index
    %30 = vector.load %arg7[%c0_18, %c0_19] : memref<32x32xbf16, #tpu.memory_space<vmem>>, vector<32x32xbf16>
    %cst_20 = arith.constant dense<0.000000e+00> : vector<8x32xf32>
    %31 = tpu.matmul %29, %30, %cst_20 {dimension_numbers = #tpu.dot_dimension_numbers<[1], [0], [0], [1], [0, 0, 1, 1], [], []>} : vector<8x32xbf16>, vector<32x32xbf16>, vector<8x32xf32> -> vector<8x32xf32>
    %c0_21 = arith.constant 0 : index
    %c0_22 = arith.constant 0 : index
    %32 = vector.load %arg8[%c0_21, %c0_22] : memref<1x32xf32, #tpu.memory_space<vmem>>, vector<1x32xf32>
    %33 = vector.broadcast %32 : vector<1x32xf32> to vector<8x32xf32>
    %34 = arith.addf %31, %33 : vector<8x32xf32>
    %c0_23 = arith.constant 0 : index
    %c0_24 = arith.constant 0 : index
    %c0_25 = arith.constant 0 : index
    %35 = vector.load %arg9[%c0_23, %c0_24, %c0_25] : memref<1x8x32xf32, #tpu.memory_space<vmem>>, vector<1x8x32xf32>
    %36 = vector.shape_cast %35 : vector<1x8x32xf32> to vector<8x32xf32>
    %37 = vector.shape_cast %34 : vector<8x32xf32> to vector<1x8x32xf32>
    tpu.vector_store %arg9[%c0_23, %c0_24, %c0_25], %37 {strides = array<i32>} : memref<1x8x32xf32, #tpu.memory_space<vmem>>, vector<1x8x32xf32>,
    return
  }
  func.func @transform_0(%arg0: i32, %arg1: i32) -> (i32, i32, i32) {
    %c0_i32 = arith.constant 0 : i32
    %c0_i32_0 = arith.constant 0 : i32
    return %arg0, %arg1, %c0_i32 : i32, i32, i32
  }
  func.func @transform_1(%arg0: i32, %arg1: i32) -> (i32, i32, i32, i32) {
    %c0_i32 = arith.constant 0 : i32
    %c0_i32_0 = arith.constant 0 : i32
    %c0_i32_1 = arith.constant 0 : i32
    %c0_i32_2 = arith.constant 0 : i32
    return %arg0, %c0_i32, %c0_i32_0, %c0_i32_1 : i32, i32, i32, i32
  }
  func.func @transform_2(%arg0: i32, %arg1: i32) -> (i32, i32, i32, i32) {
    %c0_i32 = arith.constant 0 : i32
    %c0_i32_0 = arith.constant 0 : i32
    %c0_i32_1 = arith.constant 0 : i32
    %c0_i32_2 = arith.constant 0 : i32
    return %arg0, %c0_i32, %c0_i32_0, %c0_i32_1 : i32, i32, i32, i32
  }
  func.func @transform_3(%arg0: i32, %arg1: i32) -> (i32, i32) {
    %c0_i32 = arith.constant 0 : i32
    %c0_i32_0 = arith.constant 0 : i32
    %c0_i32_1 = arith.constant 0 : i32
    return %c0_i32, %c0_i32_0 : i32, i32
  }
  func.func @transform_4(%arg0: i32, %arg1: i32) -> (i32, i32) {
    %c0_i32 = arith.constant 0 : i32
    %c0_i32_0 = arith.constant 0 : i32
    %c0_i32_1 = arith.constant 0 : i32
    return %c0_i32, %c0_i32_0 : i32, i32
  }
  func.func @transform_5(%arg0: i32, %arg1: i32) -> (i32, i32) {
    %c0_i32 = arith.constant 0 : i32
    %c0_i32_0 = arith.constant 0 : i32
    %c0_i32_1 = arith.constant 0 : i32
    return %c0_i32, %c0_i32_0 : i32, i32
  }
  func.func @transform_6(%arg0: i32, %arg1: i32) -> (i32, i32) {
    %c0_i32 = arith.constant 0 : i32
    %c0_i32_0 = arith.constant 0 : i32
    %c0_i32_1 = arith.constant 0 : i32
    return %c0_i32, %c0_i32_0 : i32, i32
  }
  func.func @transform_7(%arg0: i32, %arg1: i32) -> (i32, i32, i32) {
    %c0_i32 = arith.constant 0 : i32
    %c0_i32_0 = arith.constant 0 : i32
    return %arg0, %arg1, %c0_i32 : i32, i32, i32
  }
}

</mosaic_0001>

<bundles_post_ra>
// kernel: tpu_custom_call.1
= control target key start
LH: loop header
LB: loop body
LE: loop exit
PB: predicated region body
PF: predicated region fallthrough
CT: control target
= control target key end

     0   :  { %s2348_s0 = inlined_call_operand.hbm [shape: bf16[2,8,32], index: 0, kind: input, shape index: {}]   ;;  %s2349_s1 = inlined_call_operand.hbm [shape: bf16[2,4,8,8], index: 1, kind: input, shape index: {}]   ;;  %s2350_s2 = inlined_call_operand.hbm [shape: bf16[2,4,8,8], index: 2, kind: input, shape index: {}]   ;;  %s2351_s3 = inlined_call_operand.hbm [shape: bf16[32,32], index: 3, kind: input, shape index: {}]   ;;  %s2352_s4 = inlined_call_operand.vmem [shape: f32[1,32], index: 4, kind: input, shape index: {}]   ;;  %s2353_s5 = inlined_call_operand.hbm [shape: bf16[32,32], index: 5, kind: input, shape index: {}]   ;;  %s2354_s6 = inlined_call_operand.vmem [shape: f32[1,32], index: 6, kind: input, shape index: {}]   ;;  %s2355_s7 = inlined_call_operand.hbm [shape: f32[2,8,32], index: 7, kind: output, shape index: {}]  }
   0x1   :  { %2365 = sst [smem:[#allocation20_spill]] %s2349_s1 }
   0x2   :  { %2366 = sst [smem:[#allocation21_spill]] %s2350_s2 }
   0x3   :  { %2367 = sst [smem:[#allocation22_spill]] %s2351_s3 }
   0x4   :  { %2368 = sst [smem:[#allocation23_spill]] %s2354_s6 }
   0x5   :  { %2369 = sst [smem:[#allocation24_spill]] %s2355_s7 }
   0x6   :  { %12 = vsyncpa [#allocation3], 0 }
   0x7   :  { %14 = vsyncpa [#allocation3 + $0x1], 0 }
   0x8   :  { %15 = vsyncpa [#allocation6], 0 }
   0x9   :  { %17 = vsyncpa [#allocation6 + $0x1], 0 }
   0xa   :  { %18 = vsyncpa [#allocation9], 0 }
   0xb   :  { %19 = vsyncpa [#allocation4], 0 }
   0xc   :  { %21 = vsyncpa [#allocation4 + $0x1], 0  ;;  %s1982_s24 = smov 0   ;;  %s1984_s25 = smov 0  }
   0xd   :  { %s1986_s26 = smov 0   ;;  %s1988_s27 = smov 0  }
   0xe   :  { %s1990_s28 = smov 0   ;;  %s1992_s29 = smov 0  }
   0xf LB: > { %2370 = sst [smem:[#allocation16_spill]] %s1902_s24  ;;  %s2013_s30 = sadd.s32 4294967295, %s1922_s29   ;;  %s1922_s29 = sphi %s1992_s29, %s27_s29   ;;  %s1918_s28 = sphi %s1990_s28, %s2403_s28   ;;  %s1914_s27 = sphi %s1988_s27, %s2402_s27   ;;  %s1910_s26 = sphi %s1986_s26, %s2401_s26   ;;  %s1906_s25 = sphi %s1984_s25, %s2400_s25   ;;  %s1902_s24 = sphi %s1982_s24, %s2399_s24  }
  0x10   : > { %s1441_s8 = sadd.s32 4294967294, %s1922_s29   ;;  %p55_p0 = scmp.ne.s32.totalorder %s1910_s26, %s1906_s25 }
  0x11   : > { %p56_p1 = scmp.eq.s32.totalorder %s1922_s29, 0  ;;  %p61_p2 = scmp.ne.s32.totalorder %s1906_s25, %s1902_s24 }
  0x12   : > { %p2356_p3 = scmp.eq.s32.totalorder %s2013_s30, 0  ;;  %p223_p4 = scmp.eq.s32.totalorder %s2013_s30, 1 }
  0x13   : > { %p2024_p5 = por %p56_p1, %p55_p0  ;;  %p229_p6 = scmp.eq.s32.totalorder %s1441_s8, 1 }
  0x14   : > { %p2030_p7 = por %p2356_p3, %p61_p2  ;;  %p2034_p8 = por %p223_p4, %p55_p0 }
  0x15   : > { %p2038_p9 = por %p229_p6, %p61_p2  ;;  %p1442_p10 = scmp.ge.s32.totalorder %s1922_s29, 1 }
  0x16   : > { %p236_p11 = scmp.lt.s32.totalorder %s1922_s29, 3  ;;  %s1924_s15 = smov [#allocation8]  }
  0x17   : > { %s2374_s13 = scalar_select %p2038_p9, 1, 0 }
  0x18   : > { %p2044_p12 = pnand %p1442_p10, %p236_p11  ;;  %s248_s16 = sshll.u32 %s1924_s15, 4  ;;  %s249_s16 = int_to_ptr.vmem [resolvable:$true] %s248_s16 }
  0x19   : > { %2375 = sst [smem:[#allocation17_spill]] %s2374_s13  ;;  %s39_s18 = sadd.s32 1, %s1918_s28 }
  0x1a   : > { %p1589_p13 = pneg %p2044_p12  ;;  %s2060_s19 = sand.u32 1, %s1910_s26  }
  0x1b   : > { %p2062_p2 = scmp.ge.s32.totalorder %s39_s18, 2  ;;  %s1709_s21 = scalar_lea.vmem %s249_s16, 256 }
  0x1c   : > { %p2054_p4 = pnand %p1589_p13, %p2356_p3  ;;  %p1710_p10 = scmp.ne.s32.totalorder %s249_s16, %s1709_s21 }
  0x1d   : > { %p1717_p0 = scmp.lt.s32.totalorder %s249_s16, %s249_s16  ;;  %p1718_p3 = scmp.lt.s32.totalorder %s1709_s21, %s1709_s21 }
  0x1e   : > { %p1700_p6 = pneg %p2054_p4 }
  0x1f   : > { %p1719_p1 = por %p1718_p3, %p1717_p0 }
  0x20   : > { %p1712_p11 = pnand %p1710_p10, %p1700_p6 }
  0x22   : > { %p1713_p13 = pneg %p1712_p11 }
  0x24   : > { %p1720_p9 = pnand %p1719_p1, %p1713_p13 }
  0x26   : > { %1723 = shalt.err (!%p1720_p9)
}
  0x27   : > { %s2360_s22 = smov 64   ;;  %s2362_s23 = smov 4  }
  0x28   : > { %s2379_s3 = sld [smem:[#allocation22_spill]]  ;;  %s2405_s18 = smov (%p2062_p2, %s39_s18), 0 }
  0x29   : > { %2380 = sst [smem:[#allocation18_spill]] %s2405_s18  ;;  %p2381_p3 = scmp.lt.s32.totalorder %s1922_s29, 2 }
  0x2a   : > { %s300_s9 = sand.u32 1, %s1922_s29   ;;  %s43_s13 = ssub.s32 %s1918_s28, %s2405_s18 }
  0x2b   : > { %p2087_p9 = pnand %p2381_p3, %p2024_p5  ;;  %p46_p0 = scmp.eq.s32.totalorder %s43_s13, 0 }
  0x2c   : > { %s1448_s24 = sshll.u32 %s2060_s19, 4  ;;  %s1485_s7 = sshll.u32 %s1918_s28, 8 }
  0x2d   : > { %s2383_s6 = sadd.s32 1, %s1910_s26  ;;  %s2385_s1 = sld [smem:[#allocation20_spill]] }
  0x2e   : > { %1592 = dma.hbm_to_vmem [thread:$0]  (!%p2054_p4), %s2379_s3, 256, %s249_s16, [#allocation9], %s2360_s22, %s2360_s22, %s2362_s23  }
  0x2f   : > { %s2099_s8 = scalar_select %p46_p0, %s1910_s26, %s2383_s6  }
  0x30   : > { %s304_s15 = scalar_lea.vmem [#allocation5], %s1448_s24  ;;  %s2104_s23 = scalar_lea.sflag [#allocation6], %s300_s9 }
  0x31   : > { %2384 = sst [smem:[#allocation19_spill]] %s2099_s8  ;;  %s311_s22 = sshll.u32 %s304_s15, 4  ;;  %s312_s22 = int_to_ptr.vmem [resolvable:$true] %s311_s22 }
  0x32   : > { %p1726_p5 = pneg %p2087_p9  ;;  %s1737_s3 = scalar_lea.vmem %s312_s22, 256 }
  0x33   : > { %s310_s10 = scalar_lea.hbm %s2385_s1, %s1485_s7  ;;  %p1738_p1 = scmp.ne.s32.totalorder %s312_s22, %s1737_s3 }
  0x34   : > { %s1927_s13 = smov [#allocation5]  }
  0x35   : > { %p1740_p2 = pnand %p1738_p1, %p1726_p5  ;;  %s1742_s6 = sshll.u32 %s1927_s13, 4  ;;  %s1743_s6 = int_to_ptr.vmem [resolvable:$false] %s1742_s6 }
  0x36   : > { %s1744_s18 = scalar_lea.vmem %s1743_s6, 512  ;;  %p1745_p11 = scmp.lt.s32.totalorder %s312_s22, %s1743_s6 }
  0x37   : > { %p1741_p10 = pneg %p1740_p2  ;;  %p1746_p13 = scmp.lt.s32.totalorder %s1744_s18, %s1737_s3 }
  0x39   : > { %p1747_p3 = por %p1746_p13, %p1745_p11 }
  0x3b   : > { %p1748_p0 = pnand %p1747_p3, %p1741_p10 }
  0x3d   : > { %1751 = shalt.err (!%p1748_p0)
}
  0x3e   : > { %s2386_s9 = smov 4   ;;  %s2387_s16 = smov 64  }
  0x3f   : > { %1602 = dma.hbm_to_vmem [thread:$0]  (!%p2087_p9), %s310_s10, 256, %s312_s22, %s2104_s23, %s2387_s16, %s2387_s16, %s2386_s9  }
  0x40   : > { %s2388_s2 = sld [smem:[#allocation21_spill]]  ;;  %s325_s13 = scalar_lea.vmem [#allocation7], %s1448_s24 }
  0x41   : > { %s332_s8 = sshll.u32 %s325_s13, 4  ;;  %s1928_s6 = smov [#allocation10]   ;;  %s2138_s8 = int_to_ptr.vmem [resolvable:$true] %s332_s8 }
  0x42   : > { %s264_s3 = sshll.u32 %s1928_s6, 4  ;;  %s265_s3 = int_to_ptr.vmem [resolvable:$true] %s264_s3 }
  0x43   : > { %s1763_s18 = scalar_lea.vmem %s265_s3, 256  ;;  %p1771_p11 = scmp.lt.s32.totalorder %s265_s3, %s265_s3 }
  0x44   : > { %p1764_p1 = scmp.ne.s32.totalorder %s265_s3, %s1763_s18  ;;  %p1772_p13 = scmp.lt.s32.totalorder %s1763_s18, %s1763_s18 }
  0x46   : > { %s2120_s1 = scalar_lea.hbm %s2388_s2, %s1485_s7  ;;  %p1766_p2 = pnand %p1764_p1, %p1700_p6 }
  0x47   : > { %p1773_p3 = por %p1772_p13, %p1771_p11 }
  0x48   : > { %p1767_p10 = pneg %p1766_p2 }
  0x4a   : > { %p1774_p0 = pnand %p1773_p3, %p1767_p10 }
  0x4c   : > { %1777 = shalt.err (!%p1774_p0)
}
  0x4d   : > { %1595 = dma.hbm_to_vmem [thread:$0]  (!%p2054_p4), %s2353_s5, 256, %s265_s3, [#allocation9], %s2387_s16, %s2387_s16, %s2386_s9  }
  0x4e   : > { %s1446_s22 = sshll.u32 %s2060_s19, 2  ;;  %s1447_s10 = sshll.u32 %s1918_s28, 6 }
  0x4f   : > { %s291_s13 = scalar_lea.hbm %s2348_s0, %s1447_s10  ;;  %s285_s17 = scalar_lea.vmem [#allocation2], %s1446_s22 }
  0x50   : > { %s293_s6 = sshll.u32 %s285_s17, 4  ;;  %s282_s18 = scalar_lea.sflag [#allocation3], %s2060_s19  ;;  %s294_s6 = int_to_ptr.vmem [resolvable:$true] %s293_s6 }
  0x51   : > { %s1791_s2 = scalar_lea.vmem %s294_s6, 64  ;;  %s1929_s7 = smov [#allocation2]  }
  0x52   : > { %p1792_p6 = scmp.ne.s32.totalorder %s294_s6, %s1791_s2  ;;  %s1796_s3 = sshll.u32 %s1929_s7, 4  ;;  %s1797_s3 = int_to_ptr.vmem [resolvable:$false] %s1796_s3 }
  0x53   : > { %s1798_s24 = scalar_lea.vmem %s1797_s3, 128  ;;  %p1799_p4 = scmp.lt.s32.totalorder %s294_s6, %s1797_s3 }
  0x54   : > { %p1794_p1 = pnand %p1792_p6, %p1726_p5  ;;  %p1800_p10 = scmp.lt.s32.totalorder %s1798_s24, %s1791_s2 }
  0x56   : > { %p1795_p2 = pneg %p1794_p1  ;;  %p1801_p11 = por %p1800_p10, %p1799_p4 }
  0x58   : > { %p1802_p13 = pnand %p1801_p11, %p1795_p2 }
  0x5a   : > { %1805 = shalt.err (!%p1802_p13)
}
  0x5b   : > { %1599 = dma.hbm_to_vmem [thread:$0]  (!%p2087_p9), %s291_s13, 64, %s294_s6, %s282_s18  }
  0x5c   : > { %s1819_s19 = scalar_lea.vmem %s2138_s8, 256  ;;  %s1930_s22 = smov [#allocation7]  }
  0x5d   : > { %p1820_p3 = scmp.ne.s32.totalorder %s2138_s8, %s1819_s19  ;;  %s1824_s10 = sshll.u32 %s1930_s22, 4  ;;  %s1825_s10 = int_to_ptr.vmem [resolvable:$false] %s1824_s10 }
  0x5e   : > { %s1826_s2 = scalar_lea.vmem %s1825_s10, 512  ;;  %p1827_p1 = scmp.lt.s32.totalorder %s2138_s8, %s1825_s10 }
  0x5f   : > { %p1822_p0 = pnand %p1820_p3, %p1726_p5  ;;  %p1828_p2 = scmp.lt.s32.totalorder %s1826_s2, %s1819_s19 }
  0x61   : > { %p1823_p6 = pneg %p1822_p0  ;;  %p1829_p4 = por %p1828_p2, %p1827_p1 }
  0x63   : > { %p1830_p10 = pnand %p1829_p4, %p1823_p6 }
  0x65   : > { %1833 = shalt.err (!%p1830_p10)
}
  0x66   : > { %1605 = dma.hbm_to_vmem [thread:$0]  (!%p2087_p9), %s2120_s1, 256, %s2138_s8, %s2104_s23, %s2387_s16, %s2387_s16, %s2386_s9  }
  0x67   : > { %344 = sbr.rel (%p2044_p12) target bundleno = 1517 (0x5ed), region = 48  ;;  %s2163_s20 = sand.u32 (!%p2044_p12), 1, %s1906_s25  }
  0x68   : > { %s1455_s15 = sshll.u32 (!%p2044_p12), %s2163_s20, 2  ;;  %s347_s13 = scalar_lea.sflag (!%p2044_p12), [#allocation3], %s2163_s20 }
  0x69   : > { %s350_s17 = scalar_lea.vmem (!%p2044_p12), [#allocation2], %s1455_s15 }
  0x6c   : > { %1885 = dma.done.wait (%p2030_p7), %s347_s13, 64  }
  0x6d   : > { %1887 = vsyncadd (%p2030_p7), %s347_s13, 4294967232  ;;  %s355_s1 = sand.u32 1, %s2013_s30   ;;  %s1456_s14 = sshll.u32 %s2163_s20, 4 }
  0x6e   : > { %s356_s23 = scalar_lea.sflag [#allocation6], %s355_s1  ;;  %s2173_s21 = scalar_lea.vmem [#allocation5], %s1456_s14 }
  0x6f   : > { %1889 = dma.done.wait (%p2030_p7), %s356_s23, 512  }
  0x70   : > { %1891 = vsyncadd (%p2030_p7), %s356_s23, 4294966784  ;;  %s2179_s8 = scalar_lea.vmem [#allocation7], %s1456_s14  ;;  %p2389_p12 = scmp.eq.s32.totalorder %s2013_s30, 0 }
  0x72   : > { %1893 = dma.done.wait (%p2389_p12), [#allocation9], 512   ;;  %p2390_p9 = pmov %p2389_p12 }
  0x73   : > { %v1931_v0 = vmov 0.0   ;;  %vm1932_vm0 = vmmov 0   ;;  %v1678_v1 = vld [vmem:[#allocation8 + $0x8] sm:$0xff]   ;;  %v1679_v2 = vld [vmem:[#allocation8] sm:$0xff]   ;;  %v418_v3 = vld [vmem:[%s350_s17] sm:$0xf]  ;;  %v509_v16 = vlaneseq }
  0x74   : > { %1895 = vsyncadd (%p2390_p9), [#allocation9], 4294966784  ;;  %1509 = vmatprep.subr.bf16.mxu0 %v1931_v0  ;;  %1513 = vmatprep.mubr.msk.bf16.mxu0 %vm1932_vm0, %v1931_v0  ;;  %vm450_vm1 = vcmask 261120   ;;  %v1461_v4 = vld [vmem:[%s2352_s4] ss:$0 sm:$0xff]  ;;  %s1933_s9 = smov 104  }
  0x75   : > { %1517 = vmatprep.subr.bf16.mxu1 %v1931_v0  ;;  %1519 = vmatprep.mubr.msk.bf16.mxu1 %vm1932_vm0, %v1931_v0  ;;  %s1934_s16 = smov 120   ;;  %v419_v9 = vld [vmem:[%s2173_s21] sm:$0xf]  ;;  %vm644_vm2 = vcmask 64512   ;;  %v420_v10 = vld [vmem:[%s2173_s21 + $0x4] sm:$0xf] }
  0x76   : > { %1510 = vmatpush3.bf16.msra.mxu0 %v1678_v1  ;;  %v649_v12 = vsel %vm644_vm2, %v419_v9, 0  ;;  %v695_v13 = vsel %vm644_vm2, %v420_v10, 0  ;;  %s1935_s6 = smov 112   ;;  %v1936_v14 = vmov 1983009808   ;;  %v510_v20 = vshrl.u32 %v509_v16, 7 }
  0x77   : > { %1511 = vmatprep.subr.bf16.mxu0 %v1931_v0  ;;  %1518 = vmatpush3.bf16.xpose.msra.mxu1 %v649_v12  ;;  %v507_v15 = vunpack.c.l.s4 %v1936_v14  ;;  %v1937_v17 = vmov 1934713408   ;;  %v421_v57 = vld [vmem:[%s2173_s21 + $0x8] sm:$0xf]  ;;  %v422_v58 = vld [vmem:[%s2173_s21 + $0xc] sm:$0xf] }
  0x78   : > { %1529 = vmatprep.subr.bf16.mxu1 %v1931_v0  ;;  %v539_v18 = vunpack.c.l.s4 %v1937_v17  ;;  %v741_v61 = vsel %vm644_vm2, %v421_v57, 0  ;;  %v787_v62 = vsel %vm644_vm2, %v422_v58, 0  ;;  %vm880_vm3 = vcmask 1043456   ;;  %s1938_s18 = smov 16   ;;  %s1939_s7 = smov 8  }
  0x79   : > { %v508_v19 = vunpack.c.0.s8 %v507_v15  ;;  %s1940_s3 = smov 24   ;;  %vm1211_vm4 = vcmask 130048   ;;  %vm1213_vm5 = vcmask 195584   ;;  %s1460_s24 = sshll.u32 %s2163_s20, 3 }
  0x7a   : > { %1512 = vmatpush3.bf16.msra.mxu0 %v1679_v2  ;;  %v540_v23 = vunpack.c.0.s8 %v539_v18  ;;  %s2391_s10 = sld [smem:[#allocation23_spill]]  ;;  %s1482_s2 = sshll.u32 %s1914_s27, 7 }
  0x7b   : > { %1523 = vmatprep.subr.bf16.mxu0 %v1931_v0  ;;  %v2205_v24 = vsub.s32 %v508_v19, %v510_v20  ;;  %s416_s15 = scalar_lea.vmem [#allocation11], %s1460_s24  ;;  %s2392_s14 = sld [smem:[#allocation24_spill]] }
  0x7c   : > { %v2207_v30 = vsub.s32 %v540_v23, %v510_v20  ;;  %s1298_s13 = sshll.u32 %s416_s15, 4  ;;  %s1284_s21 = scalar_lea.sflag [#allocation4], %s2163_s20  ;;  %s2301_s13 = int_to_ptr.vmem [resolvable:$true] %s1298_s13 }
  0x7d   : > { %1514 = vmatmul.mubr.msk.bf16.vlgmr.msra.gmra.mxu0 %vm450_vm1, %v418_v3  ;;  %s1834_s27 = scalar_lea.vmem %s2301_s13, 128 }
  0x7e   : > { %1525 = vmatprep.mubr.msk.bf16.mxu0 %vm1932_vm0, %v1931_v0  ;;  %1524 = vmatpush3.bf16.xpose.msra.mxu0 %v695_v13  ;;  %p1835_p7 = scmp.ne.s32.totalorder %s2301_s13, %s1834_s27 }
  0x7f   : > { %1535 = vmatprep.subr.bf16.mxu0 %v1931_v0 }
  0x80   : > { %p1836_p5 = pnand %p1835_p7, %p2034_p8 }
  0x81   : > { %s2299_s23 = scalar_lea.hbm %s2392_s14, %s1482_s2 }
  0x82   : > { %p1837_p11 = pneg %p1836_p5 }
 0x13d   : > { %v488_v5 = vpop.f32.mrf.mxu0 }
 0x13e   : > { %v489_v6 = vadd.f32 %v1461_v4, %v488_v5 }
 0x13f   : > { %v1515_v7 = vpop.f32.mrf.mxu0 }
 0x140   : > { %501 = vrot.lane.b32.xlu1 %v489_v6, %s1933_s9  ;;  %495 = vrot.lane.b32.xlu0 %v489_v6, %s1934_s16 }
 0x141   : > { %v491_v8 = vpop.f32.mrf.mxu0 }
 0x143   : > { %v1516_v11 = vpop.f32.mrf.mxu0 }
 0x144   : > { %498 = vrot.lane.b32.xlu0 %v489_v6, %s1935_s6 }
 0x1b2   : > { %v502_v21 = vpop.permute.xlu1 %501  ;;  %v496_v22 = vpop.permute.xlu0 %495 }
 0x1b3   : > { %v520_v25 = vcombine.low %v496_v22, %v502_v21  ;;  %v521_v26 = vcombine.high %v496_v22, %v502_v21 }
 0x1b5   : > { %v528_v31 = vrot.slane %v520_v25, %v2205_v24  ;;  %v535_v32 = vrot.slane %v521_v26, %v2205_v24 }
 0x1b6   : > { %v499_v27 = vpop.permute.xlu0 %498 }
 0x1b7   : > { %v504_v28 = vcombine.low %v489_v6, %v499_v27  ;;  %v505_v29 = vcombine.high %v489_v6, %v499_v27 }
 0x1b9   : > { %v512_v33 = vrot.slane %v504_v28, %v2205_v24  ;;  %v519_v34 = vrot.slane %v505_v29, %v2205_v24 }
 0x1bb   : > { %v536_v35 = vcombine.low %v512_v33, %v528_v31  ;;  %v537_v36 = vcombine.high %v512_v33, %v528_v31  ;;  %v552_v37 = vcombine.low %v519_v34, %v535_v32  ;;  %v553_v38 = vcombine.high %v519_v34, %v535_v32 }
 0x1bd   : > { %v544_v39 = vrot.slane %v536_v35, %v2207_v30  ;;  %v551_v40 = vrot.slane %v537_v36, %v2207_v30  ;;  %v560_v41 = vrot.slane %v552_v37, %v2207_v30  ;;  %v567_v42 = vrot.slane %v553_v38, %v2207_v30 }
 0x1bf   : > { %v572_v43 = vcombine.low %v544_v39, %v551_v40  ;;  %v1465_v44 = vcombine.high %v544_v39, %v551_v40  ;;  %v588_v45 = vcombine.low %v560_v41, %v567_v42  ;;  %v1466_v46 = vcombine.high %v560_v41, %v567_v42 }
 0x1c1   : > { %v579_v47 = vrot.slane %v572_v43, %v2205_v24  ;;  %v587_v48 = vrot.slane %v1465_v44, %v2205_v24  ;;  %v595_v49 = vrot.slane %v588_v45, %v2205_v24  ;;  %v603_v50 = vrot.slane %v1466_v46, %v2205_v24 }
 0x1c3   : > { %v604_v51 = vcombine.low %v579_v47, %v587_v48  ;;  %v620_v52 = vcombine.low %v595_v49, %v603_v50  ;;  %v605_v53 = vcombine.high %v579_v47, %v587_v48  ;;  %v621_v54 = vcombine.high %v595_v49, %v603_v50  ;;  %v423_v50 = vld [vmem:[%s2179_s8] sm:$0xf] }
 0x1c5   : > { %v612_v55 = vrot.slane %v604_v51, %v2207_v30  ;;  %v628_v56 = vrot.slane %v620_v52, %v2207_v30  ;;  %v619_v2 = vrot.slane %v605_v53, %v2207_v30  ;;  %v635_v3 = vrot.slane %v621_v54, %v2207_v30  ;;  %v424_v51 = vld [vmem:[%s2179_s8 + $0x4] sm:$0xf] }
 0x1c6   : > { %v882_v52 = vsel %vm880_vm3, %v423_v50, 0  ;;  %v928_v53 = vsel %vm880_vm3, %v424_v51, 0 }
 0x1c7   : > { %v636_v59 = vcombine.low %v612_v55, %v628_v56  ;;  %v637_v60 = vcombine.high %v612_v55, %v628_v56  ;;  %v638_v4 = vcombine.low %v619_v2, %v635_v3  ;;  %v639_v5 = vcombine.high %v619_v2, %v635_v3 }
 0x1c9   : > { %v640_v63 = vpack.c.bf16 %v636_v59, %v636_v59  ;;  %v641_v1 = vpack.c.bf16 %v637_v60, %v637_v60  ;;  %v642_v6 = vpack.c.bf16 %v638_v4, %v638_v4  ;;  %v643_v7 = vpack.c.bf16 %v639_v5, %v639_v5  ;;  %v425_v59 = vld [vmem:[%s2179_s8 + $0x8] sm:$0xf] }
 0x1ca   : > { %v974_v2 = vsel %vm880_vm3, %v425_v59, 0 }
 0x1cb   : > { %1520 = vmatmul.mubr.msk.bf16.vlgmr.msra.gmra.mxu1 %vm644_vm2, %v640_v63  ;;  %1526 = vmatmul.mubr.msk.bf16.vlgmr.msra.gmra.mxu0 %vm644_vm2, %v641_v1 }
 0x1cc   : > { %1530 = vmatpush3.bf16.xpose.msra.mxu1 %v741_v61  ;;  %1536 = vmatpush3.bf16.xpose.msra.mxu0 %v787_v62  ;;  %v426_v62 = vld [vmem:[%s2179_s8 + $0xc] sm:$0xf]  ;;  %s1941_s8 = smov [#allocation11]  }
 0x1cd   : > { %1531 = vmatprep.mubr.msk.bf16.mxu1 %vm1932_vm0, %v1931_v0  ;;  %1537 = vmatprep.mubr.msk.bf16.mxu0 %vm1932_vm0, %v1931_v0  ;;  %v1020_v4 = vsel %vm880_vm3, %v426_v62, 0  ;;  %s1838_s30 = sshll.u32 %s1941_s8, 4  ;;  %s1839_s30 = int_to_ptr.vmem [resolvable:$false] %s1838_s30 }
 0x1ce   : > { %1541 = vmatprep.subr.bf16.mxu1 %v1931_v0  ;;  %1547 = vmatprep.subr.bf16.mxu0 %v1931_v0  ;;  %s1840_s11 = scalar_lea.vmem %s1839_s30, 256  ;;  %p1841_p13 = scmp.lt.s32.totalorder %s2301_s13, %s1839_s30 }
 0x1cf   : > { %p1842_p3 = scmp.lt.s32.totalorder %s1840_s11, %s1834_s27 }
 0x1d1   : > { %p1843_p0 = por %p1842_p3, %p1841_p13 }
 0x1d3   : > { %1532 = vmatmul.mubr.msk.bf16.vlgmr.msra.gmra.mxu1 %vm644_vm2, %v642_v6  ;;  %1538 = vmatmul.mubr.msk.bf16.vlgmr.msra.gmra.mxu0 %vm644_vm2, %v643_v7  ;;  %p1844_p6 = pnand %p1843_p0, %p1837_p11 }
 0x1d4   : > { %1543 = vmatprep.mubr.msk.bf16.mxu1 %vm1932_vm0, %v1931_v0  ;;  %1549 = vmatprep.mubr.msk.bf16.mxu0 %vm1932_vm0, %v1931_v0 }
 0x1d5   : > { %1542 = vmatpush3.bf16.msra.mxu1 %v882_v52  ;;  %1548 = vmatpush3.bf16.msra.mxu0 %v928_v53 }
 0x1d6   : > { %1553 = vmatprep.subr.bf16.mxu1 %v1931_v0  ;;  %1559 = vmatprep.subr.bf16.mxu0 %v1931_v0 }
 0x28b   : > { %v685_v8 = vpop.f32.mrf.mxu1  ;;  %v731_v9 = vpop.f32.mrf.mxu0 }
 0x28c   : > { %v829_v10 = vsel %vm644_vm2, %v685_v8, -inf  ;;  %v832_v11 = vsel %vm644_vm2, %v731_v9, -inf }
 0x28d   : > { %830 = vmax.xlane.f32.xlu1 %v829_v10  ;;  %v1521_v12 = vpop.f32.mrf.mxu1  ;;  %833 = vmax.xlane.f32.xlu0 %v832_v11  ;;  %v1527_v13 = vpop.f32.mrf.mxu0  ;;  %v1680_v11 = vld [vmem:[#allocation10 + $0x8] sm:$0xff]  }
 0x28f   : > { %v688_v14 = vpop.f32.mrf.mxu1  ;;  %v734_v15 = vpop.f32.mrf.mxu0 }
 0x291   : > { %v1522_v16 = vpop.f32.mrf.mxu1  ;;  %v1528_v17 = vpop.f32.mrf.mxu0 }
 0x293   : > { %v777_v18 = vpop.f32.mrf.mxu1  ;;  %v823_v19 = vpop.f32.mrf.mxu0 }
 0x294   : > { %v835_v20 = vsel %vm644_vm2, %v777_v18, -inf  ;;  %v838_v21 = vsel %vm644_vm2, %v823_v19, -inf }
 0x295   : > { %v1533_v22 = vpop.f32.mrf.mxu1  ;;  %836 = vmax.xlane.f32.xlu0 %v835_v20  ;;  %839 = vmax.xlane.f32.xlu1 %v838_v21  ;;  %v1539_v23 = vpop.f32.mrf.mxu0 }
 0x297   : > { %v780_v25 = vpop.f32.mrf.mxu1  ;;  %v826_v26 = vpop.f32.mrf.mxu0 }
 0x299   : > { %v1534_v27 = vpop.f32.mrf.mxu1  ;;  %v1540_v28 = vpop.f32.mrf.mxu0 }
 0x316   : > { %v831_v29 = vpop.xlane.xlu1 %830  ;;  %v834_v31 = vpop.xlane.xlu0 %833 }
 0x317   : > { %v841_v32 = vsub.f32 %v685_v8, %v831_v29  ;;  %v842_v33 = vsub.f32 %v731_v9, %v834_v31 }
 0x319   : > { %v845_v34 = vmul.f32 1.442695, %v841_v32  ;;  %v847_v35 = vmul.f32 1.442695, %v842_v33 }
 0x31b   : > { %1682 = vpow2.f32 %v845_v34 }
 0x31c   : > { %1684 = vpow2.f32 %v847_v35 }
 0x31e   : > { %v837_v36 = vpop.xlane.xlu0 %836  ;;  %v840_v37 = vpop.xlane.xlu1 %839 }
 0x31f   : > { %v843_v38 = vsub.f32 %v777_v18, %v837_v36  ;;  %v844_v39 = vsub.f32 %v823_v19, %v840_v37 }
 0x321   : > { %v849_v40 = vmul.f32 1.442695, %v843_v38  ;;  %v851_v41 = vmul.f32 1.442695, %v844_v39 }
 0x323   : > { %1686 = vpow2.f32 %v849_v40 }
 0x324   : > { %1688 = vpow2.f32 %v851_v41  ;;  %v1681_v41 = vld [vmem:[#allocation10] sm:$0xff]  }
 0x328   : > { %v1683_v42 = vpop.eup %1682 }
 0x329   : > { %v1685_v43 = vpop.eup %1684  ;;  %v853_v44 = vsel %vm644_vm2, %v1683_v42, 0.0 }
 0x32a   : > { %854 = vadd.xlane.f32.xlu0 %v853_v44  ;;  %v856_v45 = vsel %vm644_vm2, %v1685_v43, 0.0 }
 0x32b   : > { %857 = vadd.xlane.f32.xlu1 %v856_v45 }
 0x330   : > { %v1687_v46 = vpop.eup %1686 }
 0x331   : > { %v1689_v47 = vpop.eup %1688  ;;  %v859_v48 = vsel %vm644_vm2, %v1687_v46, 0.0 }
 0x332   : > { %860 = vadd.xlane.f32.xlu0 %v859_v48  ;;  %v862_v49 = vsel %vm644_vm2, %v1689_v47, 0.0 }
 0x333   : > { %863 = vadd.xlane.f32.xlu1 %v862_v49 }
 0x3b3   : > { %v855_v54 = vpop.xlane.xlu0 %854 }
 0x3b4   : > { %1690 = vrcp.f32 %v855_v54  ;;  %v858_v55 = vpop.xlane.xlu1 %857 }
 0x3b5   : > { %1692 = vrcp.f32 %v858_v55 }
 0x3bb   : > { %v861_v56 = vpop.xlane.xlu0 %860 }
 0x3bc   : > { %1694 = vrcp.f32 %v861_v56  ;;  %v864_v57 = vpop.xlane.xlu1 %863 }
 0x3bd   : > { %1696 = vrcp.f32 %v864_v57 }
 0x3c1   : > { %v1691_v58 = vpop.eup %1690 }
 0x3c2   : > { %v1693_v60 = vpop.eup %1692  ;;  %v869_v61 = vmul.f32 %v1691_v58, %v1683_v42 }
 0x3c3   : > { %v870_v63 = vmul.f32 %v1693_v60, %v1685_v43 }
 0x3c4   : > { %v873_v1 = vpack.c.bf16 %v869_v61, %v869_v61 }
 0x3c5   : > { %v874_v3 = vpack.c.bf16 %v870_v63, %v870_v63 }
 0x3c6   : > { %1544 = vmatmul.mubr.msk.bf16.vlgmr.msra.gmra.mxu1 %vm644_vm2, %v873_v1 }
 0x3c7   : > { %1550 = vmatmul.mubr.msk.bf16.vlgmr.msra.gmra.mxu0 %vm644_vm2, %v874_v3  ;;  %1554 = vmatpush3.bf16.msra.mxu1 %v974_v2 }
 0x3c8   : > { %1560 = vmatpush3.bf16.msra.mxu0 %v1020_v4  ;;  %1555 = vmatprep.mubr.msk.bf16.mxu1 %vm1932_vm0, %v1931_v0 }
 0x3c9   : > { %v1695_v5 = vpop.eup %1694  ;;  %1561 = vmatprep.mubr.msk.bf16.mxu0 %vm1932_vm0, %v1931_v0  ;;  %1565 = vmatprep.subr.bf16.mxu1 %v1931_v0 }
 0x3ca   : > { %v1697_v6 = vpop.eup %1696  ;;  %v871_v7 = vmul.f32 %v1695_v5, %v1687_v46 }
 0x3cb   : > { %v872_v8 = vmul.f32 %v1697_v6, %v1689_v47 }
 0x3cc   : > { %v875_v9 = vpack.c.bf16 %v871_v7, %v871_v7 }
 0x3cd   : > { %v876_v10 = vpack.c.bf16 %v872_v8, %v872_v8  ;;  %v1477_v8 = vld [vmem:[%s2391_s10] ss:$0 sm:$0xff] }
 0x3ce   : > { %1556 = vmatmul.mubr.msk.bf16.vlgmr.msra.gmra.mxu1 %vm644_vm2, %v875_v9 }
 0x3cf   : > { %1562 = vmatmul.mubr.msk.bf16.vlgmr.msra.gmra.mxu0 %vm644_vm2, %v876_v10  ;;  %1569 = vmatprep.mubr.msk.bf16.mxu1 %vm1932_vm0, %v1931_v0 }
 0x3d0   : > { %1566 = vmatpush3.bf16.msra.mxu1 %v1680_v11 }
 0x3d1   : > { %1567 = vmatprep.subr.bf16.mxu1 %v1931_v0 }
 0x3d4   : > { %1568 = vmatpush3.bf16.msra.mxu1 %v1681_v41 }
 0x486   : > { %v918_v12 = vpop.f32.mrf.mxu1 }
 0x487   : > { %v964_v13 = vpop.f32.mrf.mxu0 }
 0x488   : > { %v1545_v14 = vpop.f32.mrf.mxu1 }
 0x489   : > { %v1551_v15 = vpop.f32.mrf.mxu0 }
 0x48a   : > { %v921_v16 = vpop.f32.mrf.mxu1 }
 0x48b   : > { %v967_v17 = vpop.f32.mrf.mxu0 }
 0x48c   : > { %v1546_v18 = vpop.f32.mrf.mxu1 }
 0x48d   : > { %v1552_v19 = vpop.f32.mrf.mxu0 }
 0x48e   : > { %v1010_v20 = vpop.f32.mrf.mxu1 }
 0x48f   : > { %v1062_v21 = vcombine.low %v918_v12, %v1010_v20  ;;  %v1063_v22 = vcombine.high %v918_v12, %v1010_v20  ;;  %v1056_v23 = vpop.f32.mrf.mxu0 }
 0x490   : > { %v1078_v25 = vcombine.low %v964_v13, %v1056_v23  ;;  %v1079_v26 = vcombine.high %v964_v13, %v1056_v23  ;;  %v1557_v27 = vpop.f32.mrf.mxu1 }
 0x491   : > { %v1070_v28 = vrot.slane %v1062_v21, %v2205_v24  ;;  %v1077_v29 = vrot.slane %v1063_v22, %v2205_v24  ;;  %v1563_v0 = vpop.f32.mrf.mxu0 }
 0x492   : > { %v1086_v31 = vrot.slane %v1078_v25, %v2205_v24  ;;  %v1093_v32 = vrot.slane %v1079_v26, %v2205_v24  ;;  %v1013_v33 = vpop.f32.mrf.mxu1 }
 0x493   : > { %v1059_v34 = vpop.f32.mrf.mxu0 }
 0x494   : > { %v1094_v35 = vcombine.low %v1070_v28, %v1086_v31  ;;  %v1095_v36 = vcombine.high %v1070_v28, %v1086_v31  ;;  %v1110_v37 = vcombine.low %v1077_v29, %v1093_v32  ;;  %v1111_v38 = vcombine.high %v1077_v29, %v1093_v32  ;;  %v1558_v39 = vpop.f32.mrf.mxu1 }
 0x495   : > { %v1564_v40 = vpop.f32.mrf.mxu0 }
 0x496   : > { %v1102_v42 = vrot.slane %v1094_v35, %v2207_v30  ;;  %v1109_v43 = vrot.slane %v1095_v36, %v2207_v30  ;;  %v1118_v44 = vrot.slane %v1110_v37, %v2207_v30  ;;  %v1125_v45 = vrot.slane %v1111_v38, %v2207_v30 }
 0x498   : > { %v1130_v46 = vcombine.low %v1102_v42, %v1109_v43  ;;  %v1475_v47 = vcombine.high %v1102_v42, %v1109_v43  ;;  %v1146_v48 = vcombine.low %v1118_v44, %v1125_v45  ;;  %v1476_v49 = vcombine.high %v1118_v44, %v1125_v45 }
 0x49a   : > { %v1137_v50 = vrot.slane %v1130_v46, %v2205_v24  ;;  %v1145_v51 = vrot.slane %v1475_v47, %v2205_v24  ;;  %v1153_v52 = vrot.slane %v1146_v48, %v2205_v24  ;;  %v1161_v53 = vrot.slane %v1476_v49, %v2205_v24 }
 0x49c   : > { %v1163_v54 = vcombine.high %v1137_v50, %v1145_v51  ;;  %v1179_v55 = vcombine.high %v1153_v52, %v1161_v53  ;;  %v1162_v56 = vcombine.low %v1137_v50, %v1145_v51  ;;  %v1178_v57 = vcombine.low %v1153_v52, %v1161_v53 }
 0x49e   : > { %v1177_v58 = vrot.slane %v1163_v54, %v2207_v30  ;;  %v1193_v59 = vrot.slane %v1179_v55, %v2207_v30  ;;  %v1170_v60 = vrot.slane %v1162_v56, %v2207_v30  ;;  %v1186_v61 = vrot.slane %v1178_v57, %v2207_v30 }
 0x4a0   : > { %v1196_v62 = vcombine.low %v1177_v58, %v1193_v59  ;;  %v1195_v63 = vcombine.high %v1170_v60, %v1186_v61  ;;  %v1194_v1 = vcombine.low %v1170_v60, %v1186_v61  ;;  %v1197_v24 = vcombine.high %v1177_v58, %v1193_v59 }
 0x4a2   : > { %1203 = vrot.lane.b32.xlu1 %v1196_v62, %s1938_s18  ;;  %1199 = vrot.lane.b32.xlu0 %v1195_v63, %s1939_s7 }
 0x4a6   : > { %1207 = vrot.lane.b32.xlu1 %v1197_v24, %s1940_s3 }
 0x514   : > { %v1204_v2 = vpop.permute.xlu1 %1203  ;;  %v1200_v3 = vpop.permute.xlu0 %1199 }
 0x515   : > { %v1210_v4 = vsel %vm644_vm2, %v1194_v1, %v1200_v3 }
 0x516   : > { %v1212_v30 = vsel %vm1211_vm4, %v1210_v4, %v1204_v2 }
 0x518   : > { %v1208_v5 = vpop.permute.xlu1 %1207 }
 0x519   : > { %v1214_v6 = vsel %vm1213_vm5, %v1212_v30, %v1208_v5 }
 0x51a   : > { %v1215_v7 = vpack.c.bf16 %v1214_v6, %v1214_v6 }
 0x51c   : > { %1570 = vmatmul.mubr.msk.bf16.vlgmr.msra.gmra.mxu1 %vm450_vm1, %v1215_v7 }
 0x5dc   : > { %v1276_v9 = vpop.f32.mrf.mxu1 }
 0x5dd   : > { %v1277_v10 = vadd.f32 %v1477_v8, %v1276_v9 }
 0x5de   : > { %v1571_v11 = vpop.f32.mrf.mxu1 }
 0x5df   : > { %1282 = vst.msk [vmem:[%s416_s15] sm:$0xff] %vm450_vm1, %v1277_v10 }
 0x5e0   : > { %v1279_v12 = vpop.f32.mrf.mxu1 }
 0x5e1   : > { %1847 = shalt.err (!%p1844_p6)
}
 0x5e2   : > { %s1848_s9 = scalar_lea.hbm %s2299_s23, 128  ;;  %s1852_s6 = scalar_lea.hbm %s2392_s14, 256 }
 0x5e3   : > { %p1849_p1 = scmp.ne.s32.totalorder %s2299_s23, %s1848_s9  ;;  %p1853_p10 = scmp.lt.s32.totalorder %s2299_s23, %s2392_s14 }
 0x5e4   : > { %p1854_p12 = scmp.lt.s32.totalorder %s1852_s6, %s1848_s9 }
 0x5e5   : > { %p1850_p2 = pnand %p1849_p1, %p2034_p8 }
 0x5e6   : > { %p1855_p9 = por %p1854_p12, %p1853_p10 }
 0x5e7   : > { %p1851_p4 = pneg %p1850_p2 }
 0x5e9   : > { %p1856_p7 = pnand %p1855_p9, %p1851_p4 }
 0x5eb   : > { %1859 = shalt.err (!%p1856_p7)
}
 0x5ec   : > { %1587 = dma.vmem_to_hbm [thread:$0]  (%p2034_p8), %s2301_s13, 128, %s2299_s23, %s1284_s21   ;;  %v1572_v13 = vpop.f32.mrf.mxu1 }
 0x5ed PF: > { %s2393_s3 = sld [smem:[#allocation16_spill]]  ;;  %p2396_p11 = scmp.ge.s32.totalorder %s1922_s29, 2 }
 0x5ee   : > { %s2394_s24 = sld [smem:[#allocation17_spill]] }
 0x5f3   : > { %s1310_s19 = sand.u32 1, %s2393_s3  }
 0x5f4   : > { %p2395_p5 = scmp.ne.s32.totalorder %s2394_s24, 0  ;;  %s1311_s22 = scalar_lea.sflag [#allocation4], %s1310_s19 }
 0x5f6   : > { %p1607_p13 = pnand %p2396_p11, %p2395_p5 }
 0x5f8   : > { %p1608_p3 = pneg %p1607_p13 }
 0x5fa   : > { %1897 = dma.done.wait (%p1608_p3), %s1311_s22, 128  }
 0x5fb   : > { %1899 = vsyncadd (%p1608_p3), %s1311_s22, 4294967168  ;;  %s27_s29 = sadd.s32 1, %s1922_s29   ;;  %s2397_s12 = sld [smem:[#allocation19_spill]] }
 0x5fc   : > { %p24_p0 = scmp.ge.s32.totalorder %s27_s29, 4   ;;  %s2398_s10 = sld [smem:[#allocation18_spill]] }
 0x5fd   : > { %s2399_s24 = smov %s1906_s25  ;;  %s2400_s25 = smov %s1910_s26 }
 0x5fe   : > { %s2402_s27 = smov %s1918_s28  ;;  %26 = sbr.rel (!%p24_p0) target bundleno = 15 (0xf), region = 125 }
 0x601   : > { %s2401_s26 = smov %s2397_s12 }
 0x602   : > { %s2403_s28 = smov %s2398_s10 }
 0x603   :  { %1316 = vsyncpa [#allocation3], 1 }
 0x604   :  { %1318 = vsyncpa [#allocation3 + $0x1], 1 }
 0x605   :  { %1319 = vsyncpa [#allocation6], 1 }
 0x606   :  { %1321 = vsyncpa [#allocation6 + $0x1], 1 }
 0x607   :  { %1322 = vsyncpa [#allocation9], 1 }
 0x608   :  { %1323 = vsyncpa [#allocation4], 1 }
 0x609   :  { %1325 = vsyncpa [#allocation4 + $0x1], 1 }

</bundles_post_ra>
